<compile_context>
chip_gen: v6e
topology: v6e:2x2x1
jax: 0.10.0
libtpu: 0.0.40
codegen_flags: <defaults>
</compile_context>

<pallas_src>
import functools

import jax
import jax.numpy as jnp
from jax import lax
from jax.experimental import pallas as pl
from jax.experimental.pallas import tpu as pltpu


_VMEM_LIMIT = 32 * 1024 * 1024   # explicit scoped-VMEM budget (headroom on all gens)


# ----------------------------- small helpers ------------------------------

def _erf_approx(z):
    # Abramowitz & Stegun 7.1.26, |abs error| <= 1.5e-7 (float32 level).
    a1, a2, a3, a4, a5 = 0.254829592, -0.284496736, 1.421413741, -1.453152027, 1.061405429
    p = 0.3275911
    za = jnp.abs(z)
    t = 1.0 / (1.0 + p * za)
    poly = ((((a5 * t + a4) * t + a3) * t + a2) * t + a1) * t
    r = 1.0 - poly * jnp.exp(-za * za)
    return jnp.where(z >= 0.0, r, -r)


def _gelu_exact(x):
    # PyTorch nn.GELU() default: 0.5*x*(1+erf(x/sqrt(2)))
    return 0.5 * x * (1.0 + _erf_approx(x * 0.7071067811865476))


def _pick_tile(dim, quantum, target):
    """Largest multiple of `quantum` that divides `dim` and is <= target.

    Falls back to the full dim (always legal: block dim == array dim) when the
    dim is small or has no suitable divisor -> no partial blocks anywhere.
    """
    if dim <= target or dim % quantum != 0:
        return dim
    t = (min(target, dim) // quantum) * quantum
    while t >= quantum:
        if dim % t == 0:
            return t
        t -= quantum
    return dim


# --------------------------- pass 1: pooling -------------------------------

def _pool_kernel(x_ref, xh_ref, xw_ref, *, inv_w):
    # x_ref:  (1, C, H, Wt)   current W-tile of one batch element
    # xh_ref: (1, C, H)       resident accumulator across W tiles (mean over W)
    # xw_ref: (1, C, Wt)      written per tile                    (max  over H)
    wt = pl.program_id(1)
    x = x_ref[0].astype(jnp.float32)            # upcast so bf16 inputs pool in f32

    xw_ref[0] = jnp.max(x, axis=1)              # (C, Wt)
    psum = jnp.sum(x, axis=2)                   # (C, H) partial sum over this W tile

    @pl.when(wt == 0)
    def _():
        xh_ref[0] = psum

    @pl.when(wt != 0)
    def _():
        xh_ref[0] = xh_ref[0] + psum

    @pl.when(wt == pl.num_programs(1) - 1)
    def _():
        xh_ref[0] = xh_ref[0] * inv_w           # finalize the mean


# --------------------------- pass 2: profile --------------------------------

def _conv1d3(y, w_taps, b, seg):
    """Fused 3-tap conv (zero pad 1) on a batch-folded profile.

    y:      (Cin, B*seg)   profiles of all batches laid end-to-end
    w_taps: (Cout, 3*Cin)  kernel taps stacked along Cin (k=0,1,2)
    b:      (Cout, 1)
    Single MXU dot instead of 3 (3x fewer pushes/pops, 3x larger contraction).
    """
    cin, bl = y.shape
    zero = jnp.zeros((cin, 1), y.dtype)
    y_left = jnp.concatenate([zero, y[:, :bl - 1]], axis=1)    # y[:, l-1]
    y_right = jnp.concatenate([y[:, 1:], zero], axis=1)        # y[:, l+1]
    # Zero the taps that would leak across batch seams of the folded layout.
    # TODO(synk): pltpu.roll + mask would keep this off the store path; the
    # concat form is kept for portability of the +/-1 shift semantics.
    pos = lax.broadcasted_iota(jnp.int32, (1, bl), 1) % seg
    y_left = jnp.where(pos == 0, 0.0, y_left)
    y_right = jnp.where(pos == seg - 1, 0.0, y_right)
    y_stack = jnp.concatenate([y_left, y, y_right], axis=0)    # (3*Cin, B*seg)
    return jnp.dot(w_taps, y_stack, preferred_element_type=jnp.float32) + b


def _profile_kernel(mix_ref, xh_ref, xw_ref, w1_ref, b1_ref,
                    w3h_ref, w3w_ref, b3_ref, wch_ref, wcw_ref, bc_ref,
                    u1_ref, u2_ref, *, seg_h, seg_w):
    m1 = mix_ref[0]                              # sigmoid(mix1.w), SMEM scalar
    m2 = mix_ref[1]                              # sigmoid(mix2.w), SMEM scalar
    xh = xh_ref[...]                             # (C, B*H)
    xw = xw_ref[...]                             # (C, B*W)
    w1 = w1_ref[...]
    b1 = b1_ref[...]

    # 1x1 conv + GELU (the concat in the original is only for convenience --
    # the pointwise conv applies independently to the H and W profiles).
    y1 = _gelu_exact(jnp.dot(w1, xh, preferred_element_type=jnp.float32) + b1)
    y2 = _gelu_exact(jnp.dot(w1, xw, preferred_element_type=jnp.float32) + b1)

    # conv3x3 on (H,1)/(1,W)  ==  1-D 3-tap conv (fused single dot)
    z1 = _conv1d3(y1, w3h_ref[...], b3_ref[...], seg_h)
    z2 = _conv1d3(y2, w3w_ref[...], b3_ref[...], seg_w)

    # Mix blocks
    a1 = xh * m1 + z1 * (1.0 - m1)
    a2 = xw * m2 + z2 * (1.0 - m2)

    # con3x3  ==  1-D 3-tap conv
    u1_ref[...] = _conv1d3(a1, wch_ref[...], bc_ref[...], seg_h)
    u2_ref[...] = _conv1d3(a2, wcw_ref[...], bc_ref[...], seg_w)


# --------------------------- pass 3: gate/residual --------------------------

def _gate_kernel(x_ref, u1_ref, u2_ref, out_ref, *, ht, wt):
    # x_ref/out_ref: (1, C, Ht, Wt) tile.  u1/u2: full (1, C, H)/(1, C, W)
    # profiles (tiny), sliced in-kernel so the tiling of x is unconstrained.
    hi = pl.program_id(1)
    wi = pl.program_id(2)
    x = x_ref[0].astype(jnp.float32)
    u1 = u1_ref[0, :, pl.ds(pl.multiple_of(hi * ht, ht), ht)]   # (C, Ht)
    u2 = u2_ref[0, :, pl.ds(pl.multiple_of(wi * wt, wt), wt)]   # (C, Wt)
    gate = jax.nn.sigmoid(u1[:, :, None] * u2[:, None, :])      # (C, Ht, Wt) f32
    out_ref[0] = (x * (1.0 + gate)).astype(out_ref.dtype)       # x + x*gate


# ------------------------------ JAX wrapper ---------------------------------

def ah_attention(x, params):
    B, C, H, W = x.shape
    C2 = C // 2
    f32 = jnp.float32

    # ---- parameter plumbing (layout glue, tiny arrays) ----
    w1 = params["conv1x1_w"].reshape(C2, C).astype(f32)
    b1 = params["conv1x1_b"].reshape(C2, 1).astype(f32)
    w3 = params["conv3x3_w"].astype(f32)                 # (C, C2, 3, 3)
    w3h = w3[:, :, :, 1]                                  # effective conv along H
    w3w = w3[:, :, 1, :]                                  # effective conv along W
    w3h_f = jnp.concatenate([w3h[:, :, 0], w3h[:, :, 1], w3h[:, :, 2]], axis=1)  # (C, 3*C2)
    w3w_f = jnp.concatenate([w3w[:, :, 0], w3w[:, :, 1], w3w[:, :, 2]], axis=1)
    b3 = params["conv3x3_b"].reshape(C, 1).astype(f32)
    wc = params["con3x3_w"].astype(f32)                   # (C, C, 3, 3)
    wch = wc[:, :, :, 1]
    wcw = wc[:, :, 1, :]
    wch_f = jnp.concatenate([wch[:, :, 0], wch[:, :, 1], wch[:, :, 2]], axis=1)  # (C, 3*C)
    wcw_f = jnp.concatenate([wcw[:, :, 0], wcw[:, :, 1], wcw[:, :, 2]], axis=1)
    bc = params["con3x3_b"].reshape(C, 1).astype(f32)
    mix = jnp.stack([jax.nn.sigmoid(params["mix1_w"])[0],
                     jax.nn.sigmoid(params["mix2_w"])[0]]).astype(f32)           # (2,)

    # ---------------- pass 1: pooling (tiled over W, parallel over B) --------
    wt_pool = _pick_tile(W, 128, max(128, (4 << 20) // max(1, C * H * 4)))
    n_wp = W // wt_pool
    x_h, x_w = pl.pallas_call(
        functools.partial(_pool_kernel, inv_w=1.0 / W),
        out_shape=(jax.ShapeDtypeStruct((B, C, H), f32),
                   jax.ShapeDtypeStruct((B, C, W), f32)),
        grid_spec=pltpu.PrefetchScalarGridSpec(
            num_scalar_prefetch=0, grid=(B, n_wp),
            in_specs=[pl.BlockSpec((1, C, H, wt_pool), lambda b, w: (b, 0, 0, w))],
            out_specs=(pl.BlockSpec((1, C, H), lambda b, w: (b, 0, 0)),
                       pl.BlockSpec((1, C, wt_pool), lambda b, w: (b, 0, w)))),
        compiler_params=pltpu.CompilerParams(
            dimension_semantics=("parallel", "arbitrary"),
            vmem_limit_bytes=_VMEM_LIMIT),
    )(x)

    # ---------------- pass 2: profile path, batched over B -------------------
    # Fold B into the matmul free dim: (B, C, L) -> (C, B*L)   (layout glue).
    xh2 = x_h.transpose(1, 0, 2).reshape(C, B * H)
    xw2 = x_w.transpose(1, 0, 2).reshape(C, B * W)

    def full2(shape):
        return pl.BlockSpec(shape, lambda i: (0, 0))

    u1_2, u2_2 = pl.pallas_call(
        functools.partial(_profile_kernel, seg_h=H, seg_w=W),
        out_shape=(jax.ShapeDtypeStruct((C, B * H), f32),
                   jax.ShapeDtypeStruct((C, B * W), f32)),
        grid_spec=pltpu.PrefetchScalarGridSpec(
            num_scalar_prefetch=0, grid=(1,),
            in_specs=[pl.BlockSpec(memory_space=pltpu.MemorySpace.SMEM),  # mix scalars
                      full2((C, B * H)), full2((C, B * W)),
                      full2((C2, C)), full2((C2, 1)),
                      full2((C, 3 * C2)), full2((C, 3 * C2)), full2((C, 1)),
                      full2((C, 3 * C)), full2((C, 3 * C)), full2((C, 1))],
            out_specs=(full2((C, B * H)), full2((C, B * W)))),
        compiler_params=pltpu.CompilerParams(
            dimension_semantics=("arbitrary",),
            vmem_limit_bytes=_VMEM_LIMIT),
    )(mix, xh2, xw2, w1, b1, w3h_f, w3w_f, b3, wch_f, wcw_f, bc)

    u1 = u1_2.reshape(C, B, H).transpose(1, 0, 2)     # (B, C, H)
    u2 = u2_2.reshape(C, B, W).transpose(1, 0, 2)     # (B, C, W)

    # ---------------- pass 3: gate + residual (fully parallel, tiled) --------
    # Lane-dense (multiple-of-128) W tiles whenever W allows; for tiny W the
    # pass is overhead-bound anyway and full-W blocks are used.
    wt_g = _pick_tile(W, 128, 512)
    ht_g = _pick_tile(H, 8, max(8, (2 << 20) // max(1, C * wt_g * 4)))
    n_h, n_w = H // ht_g, W // wt_g
    out = pl.pallas_call(
        functools.partial(_gate_kernel, ht=ht_g, wt=wt_g),
        out_shape=jax.ShapeDtypeStruct((B, C, H, W), x.dtype),
        grid_spec=pltpu.PrefetchScalarGridSpec(
            num_scalar_prefetch=0, grid=(B, n_h, n_w),
            in_specs=[pl.BlockSpec((1, C, ht_g, wt_g), lambda b, h, w: (b, 0, h, w)),
                      pl.BlockSpec((1, C, H), lambda b, h, w: (b, 0, 0)),
                      pl.BlockSpec((1, C, W), lambda b, h, w: (b, 0, 0))],
            out_specs=pl.BlockSpec((1, C, ht_g, wt_g), lambda b, h, w: (b, 0, h, w))),
        compiler_params=pltpu.CompilerParams(
            dimension_semantics=("parallel", "parallel", "parallel"),
            vmem_limit_bytes=_VMEM_LIMIT),
    )(x, u1, u2)
    return out


# --------------------------- pure-JAX reference -----------------------------

def ah_attention_ref(x, params):
    B, C, H, W = x.shape

    def conv2d(inp, w, b, pad):
        out = jax.lax.conv_general_dilated(
            inp, w, (1, 1), [(pad, pad), (pad, pad)],
            dimension_numbers=("NCHW", "OIHW", "NCHW"))
        return out + b.reshape(1, -1, 1, 1)

    x_h = jnp.mean(x, axis=3, keepdims=True)        # (B,C,H,1)
    x_w = jnp.max(x, axis=2, keepdims=True)         # (B,C,1,W)
    x_hw = jnp.concatenate(
        [jnp.squeeze(x_h, 3), jnp.squeeze(x_w, 2)], axis=2)[..., None]
    y = conv2d(x_hw, params["conv1x1_w"], params["conv1x1_b"], 0)
    y = 0.5 * y * (1.0 + jax.scipy.special.erf(y / jnp.sqrt(2.0)))
    y = jnp.squeeze(y, 3)
    y1 = y[:, :, :H][..., None]
    y2 = y[:, :, H:][:, :, None, :]
    z1 = conv2d(y1, params["conv3x3_w"], params["conv3x3_b"], 1)
    z2 = conv2d(y2, params["conv3x3_w"], params["conv3x3_b"], 1)
    m1 = jax.nn.sigmoid(params["mix1_w"])
    m2 = jax.nn.sigmoid(params["mix2_w"])
    a1 = x_h * m1 + z1 * (1.0 - m1)
    a2 = x_w * m2 + z2 * (1.0 - m2)
    u1 = conv2d(a1, params["con3x3_w"], params["con3x3_b"], 1)
    u2 = conv2d(a2, params["con3x3_w"], params["con3x3_b"], 1)
    matrix = jax.nn.sigmoid(jnp.matmul(u1, u2))
    return x + x * matrix


# ---------------------------------- main -------------------------------------

if __name__ == "__main__":
    B, C, H, W = 2, 4, 16, 16        # dim = 4  (dim//2 = 2)
    C2 = C // 2

    key = jax.random.PRNGKey(0)
    ks = jax.random.split(key, 8)
    params = {
        "conv1x1_w": 0.3 * jax.random.normal(ks[0], (C2, C, 1, 1), jnp.float32),
        "conv1x1_b": 0.1 * jax.random.normal(ks[1], (C2,), jnp.float32),
        "conv3x3_w": 0.3 * jax.random.normal(ks[2], (C, C2, 3, 3), jnp.float32),
        "conv3x3_b": 0.1 * jax.random.normal(ks[3], (C,), jnp.float32),
        "con3x3_w": 0.3 * jax.random.normal(ks[4], (C, C, 3, 3), jnp.float32),
        "con3x3_b": 0.1 * jax.random.normal(ks[5], (C,), jnp.float32),
        "mix1_w": jnp.array([-1.0], jnp.float32),    # Mix(m=-1)
        "mix2_w": jnp.array([-0.6], jnp.float32),    # Mix(m=-0.6)
    }
    x = jax.random.normal(ks[6], (B, C, H, W), jnp.float32)

    out = ah_attention(x, params)
    jax.block_until_ready(out)

    ref = ah_attention_ref(x, params)
    max_err = float(jnp.max(jnp.abs(out - ref)))
    # Tightened tolerance (erf polynomial contributes ~1e-5 at these scales).
    assert max_err < 2e-4, f"mismatch vs reference, max abs err = {max_err}"

    print("KERNEL_OK")
</pallas_src>

<mosaic_0001>
module attributes {stable_mosaic.version = 11 : i64} {
  func.func @_pool_kernel(%arg0: i32, %arg1: i32, %arg2: memref<1x4x16x16xf32, #tpu.memory_space<vmem>>, %arg3: memref<1x4x16xf32, #tpu.memory_space<vmem>>, %arg4: memref<1x4x16xf32, #tpu.memory_space<vmem>>) attributes {dimension_semantics = [#tpu.dimension_semantics<parallel>, #tpu.dimension_semantics<arbitrary>], iteration_bounds = array<i64: 2, 1>, scalar_prefetch = 0 : i64, scratch_operands = 0 : i64, tpu.core_type = #tpu.core_type<tc>, window_params = [{transform_indices = @transform_0, window_bounds = array<i64: 1, 4, 16, 16>}, {transform_indices = @transform_1, window_bounds = array<i64: 1, 4, 16>}, {transform_indices = @transform_2, window_bounds = array<i64: 1, 4, 16>}]} {
    %c0 = arith.constant 0 : index
    %c0_0 = arith.constant 0 : index
    %c0_1 = arith.constant 0 : index
    %c0_2 = arith.constant 0 : index
    %0 = vector.load %arg2[%c0, %c0_0, %c0_1, %c0_2] : memref<1x4x16x16xf32, #tpu.memory_space<vmem>>, vector<1x4x16x16xf32>
    %1 = vector.shape_cast %0 : vector<1x4x16x16xf32> to vector<4x16x16xf32>
    %cst = arith.constant dense<0xFF800000> : vector<4x16xf32>
    %2 = vector.multi_reduction <maximumf>, %1, %cst [1] : vector<4x16x16xf32> to vector<4x16xf32>
    %c0_3 = arith.constant 0 : index
    %c0_4 = arith.constant 0 : index
    %c0_5 = arith.constant 0 : index
    %3 = vector.load %arg4[%c0_3, %c0_4, %c0_5] : memref<1x4x16xf32, #tpu.memory_space<vmem>>, vector<1x4x16xf32>
    %4 = vector.shape_cast %3 : vector<1x4x16xf32> to vector<4x16xf32>
    %5 = vector.shape_cast %2 : vector<4x16xf32> to vector<1x4x16xf32>
    tpu.vector_store %arg4[%c0_3, %c0_4, %c0_5], %5 {strides = array<i32>} : memref<1x4x16xf32, #tpu.memory_space<vmem>>, vector<1x4x16xf32>,
    %cst_6 = arith.constant dense<0.000000e+00> : vector<4x16xf32>
    %6 = vector.multi_reduction <add>, %1, %cst_6 [2] : vector<4x16x16xf32> to vector<4x16xf32>
    %c0_i32 = arith.constant 0 : i32
    %7 = arith.cmpi eq, %arg1, %c0_i32 : i32
    %8 = arith.extui %7 : i1 to i32
    %c0_i32_7 = arith.constant 0 : i32
    %9 = arith.cmpi ne, %8, %c0_i32_7 : i32
    scf.if %9 {
      %c0_12 = arith.constant 0 : index
      %c0_13 = arith.constant 0 : index
      %c0_14 = arith.constant 0 : index
      %16 = vector.load %arg3[%c0_12, %c0_13, %c0_14] : memref<1x4x16xf32, #tpu.memory_space<vmem>>, vector<1x4x16xf32>
      %17 = vector.shape_cast %16 : vector<1x4x16xf32> to vector<4x16xf32>
      %18 = vector.shape_cast %6 : vector<4x16xf32> to vector<1x4x16xf32>
      tpu.vector_store %arg3[%c0_12, %c0_13, %c0_14], %18 {strides = array<i32>} : memref<1x4x16xf32, #tpu.memory_space<vmem>>, vector<1x4x16xf32>,
    } else {
    }
    %c0_i32_8 = arith.constant 0 : i32
    %10 = arith.cmpi ne, %arg1, %c0_i32_8 : i32
    %11 = arith.extui %10 : i1 to i32
    %c0_i32_9 = arith.constant 0 : i32
    %12 = arith.cmpi ne, %11, %c0_i32_9 : i32
    scf.if %12 {
      %c0_12 = arith.constant 0 : index
      %c0_13 = arith.constant 0 : index
      %c0_14 = arith.constant 0 : index
      %16 = vector.load %arg3[%c0_12, %c0_13, %c0_14] : memref<1x4x16xf32, #tpu.memory_space<vmem>>, vector<1x4x16xf32>
      %17 = vector.shape_cast %16 : vector<1x4x16xf32> to vector<4x16xf32>
      %18 = arith.addf %17, %6 : vector<4x16xf32>
      %c0_15 = arith.constant 0 : index
      %c0_16 = arith.constant 0 : index
      %c0_17 = arith.constant 0 : index
      %19 = vector.load %arg3[%c0_15, %c0_16, %c0_17] : memref<1x4x16xf32, #tpu.memory_space<vmem>>, vector<1x4x16xf32>
      %20 = vector.shape_cast %19 : vector<1x4x16xf32> to vector<4x16xf32>
      %21 = vector.shape_cast %18 : vector<4x16xf32> to vector<1x4x16xf32>
      tpu.vector_store %arg3[%c0_15, %c0_16, %c0_17], %21 {strides = array<i32>} : memref<1x4x16xf32, #tpu.memory_space<vmem>>, vector<1x4x16xf32>,
    } else {
    }
    %c0_i32_10 = arith.constant 0 : i32
    %13 = arith.cmpi eq, %arg1, %c0_i32_10 : i32
    %14 = arith.extui %13 : i1 to i32
    %c0_i32_11 = arith.constant 0 : i32
    %15 = arith.cmpi ne, %14, %c0_i32_11 : i32
    scf.if %15 {
      %c0_12 = arith.constant 0 : index
      %c0_13 = arith.constant 0 : index
      %c0_14 = arith.constant 0 : index
      %16 = vector.load %arg3[%c0_12, %c0_13, %c0_14] : memref<1x4x16xf32, #tpu.memory_space<vmem>>, vector<1x4x16xf32>
      %17 = vector.shape_cast %16 : vector<1x4x16xf32> to vector<4x16xf32>
      %cst_15 = arith.constant 6.250000e-02 : f32
      %18 = vector.broadcast %cst_15 : f32 to vector<4x16xf32>
      %19 = arith.mulf %17, %18 : vector<4x16xf32>
      %c0_16 = arith.constant 0 : index
      %c0_17 = arith.constant 0 : index
      %c0_18 = arith.constant 0 : index
      %20 = vector.load %arg3[%c0_16, %c0_17, %c0_18] : memref<1x4x16xf32, #tpu.memory_space<vmem>>, vector<1x4x16xf32>
      %21 = vector.shape_cast %20 : vector<1x4x16xf32> to vector<4x16xf32>
      %22 = vector.shape_cast %19 : vector<4x16xf32> to vector<1x4x16xf32>
      tpu.vector_store %arg3[%c0_16, %c0_17, %c0_18], %22 {strides = array<i32>} : memref<1x4x16xf32, #tpu.memory_space<vmem>>, vector<1x4x16xf32>,
    } else {
    }
    return
  }
  func.func @transform_0(%arg0: i32, %arg1: i32) -> (i32, i32, i32, i32) {
    %c0_i32 = arith.constant 0 : i32
    %c0_i32_0 = arith.constant 0 : i32
    %c0_i32_1 = arith.constant 0 : i32
    return %arg0, %c0_i32, %c0_i32_0, %arg1 : i32, i32, i32, i32
  }
  func.func @transform_1(%arg0: i32, %arg1: i32) -> (i32, i32, i32) {
    %c0_i32 = arith.constant 0 : i32
    %c0_i32_0 = arith.constant 0 : i32
    %c0_i32_1 = arith.constant 0 : i32
    return %arg0, %c0_i32, %c0_i32_0 : i32, i32, i32
  }
  func.func @transform_2(%arg0: i32, %arg1: i32) -> (i32, i32, i32) {
    %c0_i32 = arith.constant 0 : i32
    %c0_i32_0 = arith.constant 0 : i32
    return %arg0, %c0_i32, %arg1 : i32, i32, i32
  }
}

</mosaic_0001>

<bundles_post_ra>
// kernel: tpu_custom_call.1
= control target key start
LH: loop header
LB: loop body
LE: loop exit
PB: predicated region body
PF: predicated region fallthrough
CT: control target
= control target key end

     0   :  { %8 = vsyncpa [#allocation3], 0  ;;  %s973_s0 = inlined_call_operand.hbm [shape: f32[2,4,16,16], index: 0, kind: input, shape index: {}]   ;;  %s974_s1 = inlined_call_operand.hbm [shape: f32[2,4,16], index: 1, kind: output, shape index: {0}]   ;;  %s975_s2 = inlined_call_operand.hbm [shape: f32[2,4,16], index: 2, kind: output, shape index: {1}]  }
   0x1   :  { %10 = vsyncpa [#allocation3 + $0x1], 0 }
   0x2   :  { %11 = vsyncpa [#allocation4], 0 }
   0x3   :  { %13 = vsyncpa [#allocation4 + $0x1], 0 }
   0x4   :  { %14 = vsyncpa [#allocation7], 0 }
   0x5   :  { %16 = vsyncpa [#allocation7 + $0x1], 0  ;;  %s787_s9 = smov 0   ;;  %s789_s10 = smov 0  }
   0x6   :  { %s791_s11 = smov 0   ;;  %s793_s12 = smov 0  }
   0x7   :  { %s795_s13 = smov 0   ;;  %s797_s14 = smov 0  }
   0x8 LB: > { %s540_s15 = sadd.s32 4294967295, %s765_s14   ;;  %s541_s16 = sadd.s32 4294967294, %s765_s14   ;;  %s765_s14 = sphi %s797_s14, %s22_s14   ;;  %s761_s13 = sphi %s795_s13, %s986_s13   ;;  %s757_s12 = sphi %s793_s12, %s985_s12   ;;  %s753_s11 = sphi %s791_s11, %s984_s11   ;;  %s749_s10 = sphi %s789_s10, %s983_s10   ;;  %s745_s9 = sphi %s787_s9, %s982_s9  }
   0x9   : > { %s34_s17 = sadd.s32 1, %s761_s13  ;;  %s43_s18 = sadd.s32 1, %s753_s11 }
   0xa   : > { %p36_p0 = scmp.ge.s32.totalorder %s34_s17, 2  ;;  %p50_p1 = scmp.ne.s32.totalorder %s753_s11, %s749_s10 }
   0xb   : > { %p51_p2 = scmp.eq.s32.totalorder %s765_s14, 0  ;;  %p56_p3 = scmp.ne.s32.totalorder %s749_s10, %s745_s9 }
   0xc   : > { %s988_s17 = smov (%p36_p0, %s34_s17), 0  ;;  %p57_p5 = scmp.eq.s32.totalorder %s540_s15, 0 }
   0xd   : > { %p828_p4 = por %p51_p2, %p50_p1  ;;  %s38_s20 = ssub.s32 %s761_s13, %s988_s17 }
   0xe   : > { %p80_p6 = scmp.eq.s32.totalorder %s540_s15, 1  ;;  %p41_p7 = scmp.eq.s32.totalorder %s38_s20, 0 }
   0xf   : > { %p834_p8 = por %p57_p5, %p56_p3  ;;  %p86_p10 = scmp.eq.s32.totalorder %s541_s16, 1 }
  0x10   : > { %p838_p9 = por %p80_p6, %p50_p1  ;;  %p575_p13 = scmp.lt.s32.totalorder %s765_s14, 2 }
  0x11   : > { %s843_s23 = scalar_select %p41_p7, %s753_s11, %s43_s18  }
  0x12   : > { %p845_p11 = por %p86_p10, %p56_p3  ;;  %s134_s25 = sand.u32 1, %s753_s11  }
  0x13   : > { %s544_s26 = sshll.u32 %s134_s25, 6  ;;  %s557_s27 = sshll.u32 %s761_s13, 10 }
  0x14   : > { %s145_s30 = scalar_lea.hbm %s973_s0, %s557_s27  ;;  %s138_s3 = scalar_lea.vmem [#allocation2], %s544_s26 }
  0x15   : > { %s146_s4 = sshll.u32 %s138_s3, 4  ;;  %p858_p0 = pnand %p575_p13, %p828_p4  ;;  %s147_s4 = int_to_ptr.vmem [resolvable:$true] %s146_s4 }
  0x16   : > { %p547_p1 = scmp.ge.s32.totalorder %s765_s14, 1  ;;  %s135_s6 = scalar_lea.sflag [#allocation3], %s134_s25 }
  0x17   : > { %p629_p2 = pneg %p858_p0  ;;  %s640_s7 = scalar_lea.vmem %s147_s4, 1024 }
  0x18   : > { %p641_p3 = scmp.ne.s32.totalorder %s147_s4, %s640_s7  ;;  %s767_s8 = smov [#allocation2]  }
  0x19   : > { %s645_s15 = sshll.u32 %s767_s8, 4  ;;  %s646_s15 = int_to_ptr.vmem [resolvable:$false] %s645_s15 }
  0x1a   : > { %p643_p5 = pnand %p641_p3, %p629_p2  ;;  %s647_s16 = scalar_lea.vmem %s646_s15, 2048 }
  0x1b   : > { %p648_p7 = scmp.lt.s32.totalorder %s147_s4, %s646_s15  ;;  %p649_p10 = scmp.lt.s32.totalorder %s647_s16, %s640_s7 }
  0x1c   : > { %p644_p6 = pneg %p643_p5 }
  0x1d   : > { %p650_p12 = por %p649_p10, %p648_p7 }
  0x1f   : > { %p651_p4 = pnand %p650_p12, %p644_p6 }
  0x21   : > { %654 = shalt.err (!%p651_p4)
}
  0x22   : > { %s768_s18 = smov 128   ;;  %s769_s19 = smov 8  }
  0x23   : > { %567 = dma.hbm_to_vmem [thread:$0]  (!%p858_p0), %s145_s30, 1024, %s147_s4, %s135_s6, %s768_s18, %s768_s18, %s769_s19  }
  0x24   : > { %p154_p13 = scmp.lt.s32.totalorder %s765_s14, 3 }
  0x26   : > { %p155_p2 = pnand %p547_p1, %p154_p13 }
  0x27   : > { %s871_s20 = sand.u32 (!%p155_p2), 1, %s749_s10  }
  0x28   : > { %158 = sbr.rel (%p155_p2) target bundleno = 225 (0xe1), region = 24  ;;  %s548_s25 = sshll.u32 (!%p155_p2), %s871_s20, 6 }
  0x29   : > { %s161_s26 = scalar_lea.sflag (!%p155_p2), [#allocation3], %s871_s20  ;;  %s164_s27 = scalar_lea.vmem (!%p155_p2), [#allocation2], %s548_s25 }
  0x2d   : > { %732 = dma.done.wait (%p834_p8), %s161_s26, 1024  }
  0x2e   : > { %734 = vsyncadd (%p834_p8), %s161_s26, 4294966272  ;;  %vm198_vm0 = vcmask 130048   ;;  %v192_v0 = vld [vmem:[%s164_s27 + $0x10] sm:$0xff]  ;;  %v190_v1 = vld [vmem:[%s164_s27] sm:$0xff]  ;;  %vm239_vm1 = vcmask 1041409   ;;  %vm241_vm2 = vcmask 1042434  }
  0x2f   : > { %v193_v2 = vld [vmem:[%s164_s27 + $0x18] sm:$0xff]  ;;  %v254_v3 = vsel %vm198_vm0, %v192_v0, 0.0  ;;  %v208_v4 = vsel %vm198_vm0, %v192_v0, -inf  ;;  %v248_v5 = vsel %vm198_vm0, %v190_v1, 0.0  ;;  %v199_v6 = vsel %vm198_vm0, %v190_v1, -inf  ;;  %v191_v7 = vld [vmem:[%s164_s27 + $0x8] sm:$0xff] }
  0x30   : > { %255 = vadd.xlane.f32.xlu1 %v254_v3  ;;  %249 = vadd.xlane.f32.xlu0 %v248_v5  ;;  %v209_v8 = vsel %vm198_vm0, %v193_v2, -inf  ;;  %v257_v9 = vsel %vm198_vm0, %v193_v2, 0.0  ;;  %v200_v10 = vsel %vm198_vm0, %v191_v7, -inf  ;;  %v195_v11 = vld [vmem:[%s164_s27 + $0x28] sm:$0xff]  ;;  %v251_v13 = vsel %vm198_vm0, %v191_v7, 0.0  ;;  %v194_v16 = vld [vmem:[%s164_s27 + $0x20] sm:$0xff] }
  0x31   : > { %v210_v12 = vmax.f32 %v208_v4, %v209_v8  ;;  %v201_v14 = vmax.f32 %v199_v6, %v200_v10  ;;  %v218_v15 = vsel %vm198_vm0, %v195_v11, -inf  ;;  %v217_v17 = vsel %vm198_vm0, %v194_v16, -inf  ;;  %v197_v18 = vld [vmem:[%s164_s27 + $0x38] sm:$0xff]  ;;  %v196_v19 = vld [vmem:[%s164_s27 + $0x30] sm:$0xff]  ;;  %s549_s21 = sshll.u32 %s871_s20, 2  ;;  %s553_s28 = sshll.u32 %s757_s12, 6 }
  0x32   : > { %v219_v20 = vmax.f32 %v217_v17, %v218_v15  ;;  %v227_v21 = vsel %vm198_vm0, %v197_v18, -inf  ;;  %v226_v22 = vsel %vm198_vm0, %v196_v19, -inf  ;;  %v263_v25 = vsel %vm198_vm0, %v195_v11, 0.0  ;;  %s189_s29 = scalar_lea.vmem [#allocation6], %s549_s21  ;;  %s425_s4 = scalar_lea.hbm %s975_s2, %s553_s28 }
  0x33   : > { %v211_v23 = vrot.slane %v210_v12, 4  ;;  %v202_v24 = vrot.slane %v201_v14, 4  ;;  %v260_v26 = vsel %vm198_vm0, %v194_v16, 0.0  ;;  %v228_v27 = vmax.f32 %v226_v22, %v227_v21  ;;  %s427_s5 = sshll.u32 %s189_s29, 4  ;;  %s400_s6 = scalar_lea.sflag [#allocation7], %s871_s20  ;;  %s428_s5 = int_to_ptr.vmem [resolvable:$true] %s427_s5 }
  0x34   : > { %258 = vadd.xlane.f32.xlu1 %v257_v9  ;;  %252 = vadd.xlane.f32.xlu0 %v251_v13  ;;  %v220_v28 = vrot.slane %v219_v20, 4  ;;  %v269_v31 = vsel %vm198_vm0, %v197_v18, 0.0  ;;  %v266_v32 = vsel %vm198_vm0, %v196_v19, 0.0  ;;  %vm243_vm3 = vcmask 1043459   ;;  %s655_s7 = scalar_lea.vmem %s428_s5, 64  ;;  %s770_s8 = smov [#allocation6]  }
  0x35   : > { %v212_v29 = vmax.f32 %v210_v12, %v211_v23  ;;  %v203_v30 = vmax.f32 %v201_v14, %v202_v24  ;;  %v229_v33 = vrot.slane %v228_v27, 4  ;;  %vm246_vm4 = vcmask 125952   ;;  %p656_p8 = scmp.ne.s32.totalorder %s428_s5, %s655_s7  ;;  %s659_s15 = sshll.u32 %s770_s8, 4  ;;  %s660_s15 = int_to_ptr.vmem [resolvable:$false] %s659_s15 }
  0x36   : > { %v221_v34 = vmax.f32 %v219_v20, %v220_v28  ;;  %s661_s16 = scalar_lea.vmem %s660_s15, 128  ;;  %p662_p1 = scmp.lt.s32.totalorder %s428_s5, %s660_s15 }
  0x37   : > { %v213_v35 = vrot.slane %v212_v29, 2  ;;  %v204_v36 = vrot.slane %v203_v30, 2  ;;  %v230_v37 = vmax.f32 %v228_v27, %v229_v33  ;;  %p657_p12 = pnand %p656_p8, %p838_p9  ;;  %p663_p3 = scmp.lt.s32.totalorder %s661_s16, %s655_s7 }
  0x38   : > { %264 = vadd.xlane.f32.xlu1 %v263_v25  ;;  %261 = vadd.xlane.f32.xlu0 %v260_v26  ;;  %v222_v38 = vrot.slane %v221_v34, 2 }
  0x39   : > { %v214_v39 = vmax.f32 %v212_v29, %v213_v35  ;;  %v205_v40 = vmax.f32 %v203_v30, %v204_v36  ;;  %v231_v41 = vrot.slane %v230_v37, 2  ;;  %p658_p0 = pneg %p657_p12  ;;  %p664_p5 = por %p663_p3, %p662_p1 }
  0x3a   : > { %v223_v42 = vmax.f32 %v221_v34, %v222_v38 }
  0x3b   : > { %v215_v43 = vrot.slane %v214_v39, 1  ;;  %v206_v44 = vrot.slane %v205_v40, 1  ;;  %v232_v45 = vmax.f32 %v230_v37, %v231_v41  ;;  %p665_p6 = pnand %p664_p5, %p658_p0 }
  0x3c   : > { %270 = vadd.xlane.f32.xlu1 %v269_v31  ;;  %267 = vadd.xlane.f32.xlu0 %v266_v32  ;;  %v224_v46 = vrot.slane %v223_v42, 1 }
  0x3d   : > { %v216_v47 = vmax.f32 %v214_v39, %v215_v43  ;;  %v207_v48 = vmax.f32 %v205_v40, %v206_v44  ;;  %v233_v49 = vrot.slane %v232_v45, 1 }
  0x3e   : > { %v225_v50 = vmax.f32 %v223_v42, %v224_v46 }
  0x3f   : > { %v240_v51 = vsel %vm239_vm1, %v216_v47, %v207_v48  ;;  %v234_v52 = vmax.f32 %v232_v45, %v233_v49 }
  0x40   : > { %v242_v53 = vsel %vm241_vm2, %v225_v50, %v240_v51 }
  0x41   : > { %v244_v54 = vsel %vm243_vm3, %v234_v52, %v242_v53 }
  0x42   : > { %247 = vst.msk [vmem:[%s189_s29] sm:$0xf] %vm246_vm4, %v244_v54 }
  0x43   : > { %668 = shalt.err (!%p665_p6)
}
  0x44   : > { %s669_s18 = scalar_lea.hbm %s425_s4, 64  ;;  %s673_s26 = scalar_lea.hbm %s975_s2, 128 }
  0x45   : > { %p670_p7 = scmp.ne.s32.totalorder %s425_s4, %s669_s18  ;;  %p674_p13 = scmp.lt.s32.totalorder %s425_s4, %s975_s2 }
  0x46   : > { %p675_p2 = scmp.lt.s32.totalorder %s673_s26, %s669_s18 }
  0x47   : > { %p671_p10 = pnand %p670_p7, %p838_p9 }
  0x48   : > { %p676_p8 = por %p675_p2, %p674_p13 }
  0x49   : > { %p672_p4 = pneg %p671_p10 }
  0x4b   : > { %p677_p12 = pnand %p676_p8, %p672_p4 }
  0x4d   : > { %680 = shalt.err (!%p677_p12)
}
  0x4e   : > { %561 = dma.vmem_to_hbm [thread:$0]  (%p838_p9), %s428_s5, 64, %s425_s4, %s400_s6   ;;  %v284_v55 = vlaneseq  ;;  %vm295_vm5 = vcmask 130112  }
  0x4f   : > { %s182_s30 = scalar_lea.vmem [#allocation5], %s549_s21  ;;  %s411_s6 = scalar_lea.hbm %s974_s1, %s553_s28 }
  0x50   : > { %v285_v56 = vand.u32 127, %v284_v55  ;;  %v287_v60 = vshrl.u32 %v284_v55, 7  ;;  %s413_s3 = sshll.u32 %s182_s30, 4  ;;  %s395_s7 = scalar_lea.sflag [#allocation4], %s871_s20  ;;  %s414_s3 = int_to_ptr.vmem [resolvable:$true] %s413_s3 }
  0x51   : > { %s681_s8 = scalar_lea.vmem %s414_s3, 64  ;;  %s771_s21 = smov [#allocation5]  }
  0x52   : > { %v290_v57 = vadd.s32 4294967288, %v285_v56  ;;  %v288_v0 = vsub.s32 %v285_v56, %v287_v60  ;;  %p682_p0 = scmp.ne.s32.totalorder %s414_s3, %s681_s8  ;;  %s685_s15 = sshll.u32 %s771_s21, 4  ;;  %s686_s15 = int_to_ptr.vmem [resolvable:$false] %s685_s15 }
  0x53   : > { %s687_s16 = scalar_lea.vmem %s686_s15, 128  ;;  %p688_p5 = scmp.lt.s32.totalorder %s414_s3, %s686_s15 }
  0x54   : > { %v293_v61 = vsub.s32 %v290_v57, %v287_v60  ;;  %p683_p1 = pnand %p682_p0, %p838_p9  ;;  %p689_p6 = scmp.lt.s32.totalorder %s687_s16, %s681_s8 }
  0x56   : > { %p684_p3 = pneg %p683_p1  ;;  %p690_p7 = por %p689_p6, %p688_p5 }
  0x58   : > { %p691_p10 = pnand %p690_p7, %p684_p3 }
  0xb9   : > { %v256_v58 = vpop.xlane.xlu1 %255  ;;  %v250_v59 = vpop.xlane.xlu0 %249 }
  0xba   : > { %v300_v5 = vrot.slane %v256_v58, %v288_v0  ;;  %v289_v6 = vrot.slane %v250_v59, %v288_v0 }
  0xbd   : > { %v259_v62 = vpop.xlane.xlu1 %258  ;;  %v253_v63 = vpop.xlane.xlu0 %252 }
  0xbe   : > { %v304_v1 = vrot.slane %v259_v62, %v293_v61  ;;  %v294_v2 = vrot.slane %v253_v63, %v293_v61 }
  0xc0   : > { %v305_v9 = vsel %vm295_vm5, %v304_v1, %v300_v5  ;;  %v296_v10 = vsel %vm295_vm5, %v294_v2, %v289_v6 }
  0xc1   : > { %v265_v3 = vpop.xlane.xlu1 %264  ;;  %v262_v4 = vpop.xlane.xlu0 %261  ;;  %v324_v16 = vsel %vm239_vm1, %v305_v9, %v296_v10 }
  0xc2   : > { %v313_v7 = vrot.slane %v265_v3, %v293_v61  ;;  %v309_v8 = vrot.slane %v262_v4, %v288_v0 }
  0xc4   : > { %v314_v11 = vsel %vm295_vm5, %v313_v7, %v309_v8 }
  0xc5   : > { %v271_v12 = vpop.xlane.xlu1 %270  ;;  %v268_v13 = vpop.xlane.xlu0 %267  ;;  %v325_v17 = vsel %vm241_vm2, %v314_v11, %v324_v16 }
  0xc6   : > { %v322_v14 = vrot.slane %v271_v12, %v293_v61  ;;  %v318_v15 = vrot.slane %v268_v13, %v288_v0 }
  0xc8   : > { %v323_v18 = vsel %vm295_vm5, %v322_v14, %v318_v15 }
  0xc9   : > { %v326_v19 = vsel %vm243_vm3, %v323_v18, %v325_v17 }
  0xca   : > { %328 = vst.msk [vmem:[%s182_s30] sm:$0xf] %vm246_vm4, %v326_v19 }
  0xd1   : > { %v391_v20 = vld [vmem:[%s182_s30] sm:$0xf] }
  0xd2   : > { %v392_v21 = vmul.f32 0.0625, %v391_v20 }
  0xd4   : > { %393 = vst.msk [vmem:[%s182_s30] sm:$0xf] %vm246_vm4, %v392_v21 }
  0xd5   : > { %694 = shalt.err (!%p691_p10)
}
  0xd6   : > { %s695_s12 = scalar_lea.hbm %s411_s6, 64  ;;  %s699_s18 = scalar_lea.hbm %s974_s1, 128 }
  0xd7   : > { %p696_p4 = scmp.ne.s32.totalorder %s411_s6, %s695_s12  ;;  %p700_p8 = scmp.lt.s32.totalorder %s411_s6, %s974_s1 }
  0xd8   : > { %p701_p12 = scmp.lt.s32.totalorder %s699_s18, %s695_s12 }
  0xd9   : > { %p697_p13 = pnand %p696_p4, %p838_p9 }
  0xda   : > { %p702_p0 = por %p701_p12, %p700_p8 }
  0xdb   : > { %p698_p2 = pneg %p697_p13 }
  0xdd   : > { %p703_p1 = pnand %p702_p0, %p698_p2 }
  0xdf   : > { %706 = shalt.err (!%p703_p1)
}
  0xe0   : > { %560 = dma.vmem_to_hbm [thread:$0]  (%p838_p9), %s414_s3, 64, %s411_s6, %s395_s7  }
  0xe1 PF: > { %s439_s26 = sand.u32 1, %s745_s9   ;;  %p981_p3 = scmp.ge.s32.totalorder %s765_s14, 2 }
  0xe2   : > { %s440_s27 = scalar_lea.sflag [#allocation4], %s439_s26 }
  0xe3   : > { %p569_p5 = pnand %p981_p3, %p845_p11 }
  0xe5   : > { %p570_p6 = pneg %p569_p5 }
  0xe7   : > { %736 = dma.done.wait (%p570_p6), %s440_s27, 64  }
  0xe8   : > { %738 = vsyncadd (%p570_p6), %s440_s27, 4294967232  ;;  %s449_s29 = scalar_lea.sflag [#allocation7], %s439_s26 }
  0xe9   : > { %740 = dma.done.wait (%p570_p6), %s449_s29, 64  }
  0xea   : > { %742 = vsyncadd (%p570_p6), %s449_s29, 4294967232  ;;  %s22_s14 = sadd.s32 1, %s765_s14   ;;  %s982_s9 = smov %s749_s10 }
  0xeb   : > { %p19_p7 = scmp.ge.s32.totalorder %s22_s14, 4   ;;  %s983_s10 = smov %s753_s11 }
  0xec   : > { %s984_s11 = smov %s843_s23  ;;  %s985_s12 = smov %s761_s13 }
  0xed   : > { %s986_s13 = smov %s988_s17  ;;  %21 = sbr.rel (!%p19_p7) target bundleno = 8 (0x8), region = 98 }
  0xf2   :  { %454 = vsyncpa [#allocation3], 1 }
  0xf3   :  { %456 = vsyncpa [#allocation3 + $0x1], 1 }
  0xf4   :  { %457 = vsyncpa [#allocation4], 1 }
  0xf5   :  { %459 = vsyncpa [#allocation4 + $0x1], 1 }
  0xf6   :  { %460 = vsyncpa [#allocation7], 1 }
  0xf7   :  { %462 = vsyncpa [#allocation7 + $0x1], 1 }

</bundles_post_ra>
